<compile_context>
chip_gen: v7x
topology: tpu7x:2x2x1
jax: 0.10.0
libtpu: 0.0.40
codegen_flags: <defaults>
</compile_context>

<pallas_src>
import jax
import jax.numpy as jnp
from jax.experimental import pallas as pl
from jax.experimental.pallas import tpu as pltpu

_N_SCALARS = 10  # tx, ty, tz, scale, fx, fy, cx, cy, trans_est_z, depth_loss_weight


def _scale_translation_loss_kernel(data_ref,   # VMEM (6, 1, Npad) f32: x,y,z,img_u,img_v,mask
                                   scal_ref,   # SMEM (10,)        f32: coalesced scalars
                                   out_ref):   # SMEM (1, 1)       f32: scalar loss
    tx = scal_ref[0]
    ty = scal_ref[1]
    tz = scal_ref[2]
    scale = scal_ref[3]
    fx = scal_ref[4]
    fy = scal_ref[5]
    cx = scal_ref[6]
    cy = scal_ref[7]
    te_z = scal_ref[8]
    depth_w = scal_ref[9]

    # scale * joint_cam + translation  (all (1, Npad) planes, lane-dense)
    px = scale * data_ref[0] + tx
    py = scale * data_ref[1] + ty
    pz = scale * data_ref[2] + tz

    # Shared exact reciprocal of depth; one divide feeds both u and v.
    inv_z = 1.0 / pz
    u = fx * (px * inv_z) + cx
    v = fy * (py * inv_z) + cy

    # mask already contains data_weight**2 on selected joints and 0 on
    # non-selected joints / padding; the select keeps any non-finite value on
    # padded lanes (where mask == 0) out of the reduction.
    m = data_ref[5]
    diff = jnp.abs(data_ref[3] - u) + jnp.abs(data_ref[4] - v)
    err = jnp.where(m > 0.0, diff * m, 0.0)

    dz = tz - te_z
    out_ref[0, 0] = jnp.sum(err) + depth_w * (dz * dz)


@jax.jit
def scale_translation_loss(joint_cam, joint_img, hand_translation, hand_scale,
                           init_joints_idxs, trans_estimation, camera_params,
                           data_weight=1.0, depth_loss_weight=1000.0):
    """joint_cam: (B, J, 3), joint_img: (B, J, 2), hand_translation: (3,), hand_scale: scalar."""
    f32 = jnp.float32
    B, J, _ = joint_cam.shape
    n = B * J
    n_pad = -(-n // 128) * 128  # lane-dense: pad flattened joint axis to multiple of 128

    # --- layout glue (fused into this single jitted dispatch) -------------------
    cam_flat = joint_cam.astype(f32).reshape(n, 3).T      # (3, n): x, y, z planes
    img_flat = joint_img.astype(f32).reshape(n, 2).T      # (2, n): u, v planes

    # Selection mask via scatter-ADD so duplicated indices behave exactly like
    # torch.index_select; data_weight**2 is folded in here.
    joint_mask = jnp.zeros((J,), f32).at[jnp.asarray(init_joints_idxs)].add(1.0)
    mask_flat = jnp.tile(joint_mask, B) * jnp.asarray(data_weight, f32) ** 2

    # Pad cam planes with 1.0 (keeps 1/pz finite on padding); img/mask pad with 0.
    cam_pad = jnp.ones((3, n_pad), f32).at[:, :n].set(cam_flat)
    img_pad = jnp.zeros((2, n_pad), f32).at[:, :n].set(img_flat)
    mask_pad = jnp.zeros((1, n_pad), f32).at[0, :n].set(mask_flat)
    data = jnp.concatenate([cam_pad, img_pad, mask_pad], axis=0).reshape(6, 1, n_pad)

    # Single coalesced SMEM scalar operand.
    scal = jnp.concatenate([
        jnp.asarray(hand_translation, f32).reshape(3),       # 0..2: tx, ty, tz
        jnp.asarray(hand_scale, f32).reshape(1),              # 3   : scale
        jnp.asarray(camera_params, f32).reshape(4),            # 4..7: fx, fy, cx, cy
        jnp.asarray(trans_estimation, f32).reshape(3)[2:3],    # 8   : trans_est_z
        jnp.asarray(depth_loss_weight, f32).reshape(1),        # 9   : depth_loss_weight
    ])

    vmem = pl.BlockSpec(memory_space=pltpu.MemorySpace.VMEM)
    smem = pl.BlockSpec(memory_space=pltpu.MemorySpace.SMEM)

    out = pl.pallas_call(
        _scale_translation_loss_kernel,
        out_shape=jax.ShapeDtypeStruct((1, 1), jnp.float32),
        in_specs=[vmem, smem],
        out_specs=smem,
        cost_estimate=pl.CostEstimate(
            flops=18 * n_pad,
            transcendentals=n_pad,
            bytes_accessed=(6 * n_pad + _N_SCALARS + 1) * 4,
        ),
    )(data, scal)
    # TODO(synk): for large batched fitting (B*J >> 128), add a "parallel" grid over
    # the flattened joint axis with per-block partial sums (v7x dual-TC, VMEM limits).
    return out[0, 0]


def _reference_loss(joint_cam, joint_img, trans, scale, idxs, trans_est,
                    fx, fy, cx, cy, data_weight, depth_loss_weight):
    # Plain-JAX reference following the torch code literally (index_select after projection).
    p = scale * joint_cam + trans
    proj = jnp.stack([fx * p[..., 0] / p[..., 2] + cx,
                      fy * p[..., 1] / p[..., 2] + cy], axis=-1)
    joint_error = joint_img[:, idxs, :] - proj[:, idxs, :]
    joint_loss = jnp.sum(jnp.abs(joint_error)) * data_weight ** 2
    depth_loss = depth_loss_weight * jnp.abs(trans[2] - trans_est[2]) ** 2
    return joint_loss + depth_loss


if __name__ == "__main__":
    key = jax.random.PRNGKey(0)
    kxy, kz, kimg = jax.random.split(key, 3)

    B, J = 2, 16
    init_joints_idxs = jnp.array([0, 4, 8, 12], dtype=jnp.int32)

    # 3D joints: small xy, positive depth so the projection is well-defined.
    xy = 0.2 * jax.random.normal(kxy, (B, J, 2), dtype=jnp.float32)
    z = jax.random.uniform(kz, (B, J, 1), dtype=jnp.float32, minval=0.5, maxval=1.5)
    joint_cam = jnp.concatenate([xy, z], axis=-1)                     # (B, J, 3)
    joint_img = jax.random.uniform(kimg, (B, J, 2), dtype=jnp.float32,
                                   minval=0.0, maxval=256.0)          # (B, J, 2)

    hand_translation = jnp.array([0.05, -0.03, 0.8], dtype=jnp.float32)
    hand_scale = jnp.float32(1.2)
    trans_estimation = jnp.array([0.0, 0.0, 0.6], dtype=jnp.float32)  # buffer from __init__
    camera_params = jnp.array([500.0, 500.0, 128.0, 128.0], dtype=jnp.float32)  # fx, fy, cx, cy
    data_weight = 1.0
    depth_loss_weight = 1000.0

    loss = scale_translation_loss(joint_cam, joint_img, hand_translation, hand_scale,
                                  init_joints_idxs, trans_estimation, camera_params,
                                  data_weight=data_weight,
                                  depth_loss_weight=depth_loss_weight)
    loss = jax.block_until_ready(loss)

    ref = _reference_loss(joint_cam, joint_img, hand_translation, hand_scale,
                          init_joints_idxs, trans_estimation,
                          500.0, 500.0, 128.0, 128.0, data_weight, depth_loss_weight)

    assert jnp.allclose(loss, ref, rtol=1e-4, atol=1e-3), (loss, ref)
    print("KERNEL_OK")
</pallas_src>

<mosaic_0001>
module attributes {stable_mosaic.version = 11 : i64} {
  func.func @_scale_translation_loss_kernel(%arg0: memref<6x1x128xf32, #tpu.memory_space<vmem>>, %arg1: memref<10xf32, #tpu.memory_space<smem>>, %arg2: memref<1x1xf32, #tpu.memory_space<smem>>) attributes {dimension_semantics = [], scalar_prefetch = 0 : i64, scratch_operands = 0 : i64, tpu.core_type = #tpu.core_type<tc>} {
    %c0 = arith.constant 0 : index
    %0 = memref.load %arg1[%c0] : memref<10xf32, #tpu.memory_space<smem>>
    %c1 = arith.constant 1 : index
    %1 = memref.load %arg1[%c1] : memref<10xf32, #tpu.memory_space<smem>>
    %c2 = arith.constant 2 : index
    %2 = memref.load %arg1[%c2] : memref<10xf32, #tpu.memory_space<smem>>
    %c3 = arith.constant 3 : index
    %3 = memref.load %arg1[%c3] : memref<10xf32, #tpu.memory_space<smem>>
    %c4 = arith.constant 4 : index
    %4 = memref.load %arg1[%c4] : memref<10xf32, #tpu.memory_space<smem>>
    %c5 = arith.constant 5 : index
    %5 = memref.load %arg1[%c5] : memref<10xf32, #tpu.memory_space<smem>>
    %c6 = arith.constant 6 : index
    %6 = memref.load %arg1[%c6] : memref<10xf32, #tpu.memory_space<smem>>
    %c7 = arith.constant 7 : index
    %7 = memref.load %arg1[%c7] : memref<10xf32, #tpu.memory_space<smem>>
    %c8 = arith.constant 8 : index
    %8 = memref.load %arg1[%c8] : memref<10xf32, #tpu.memory_space<smem>>
    %c9 = arith.constant 9 : index
    %9 = memref.load %arg1[%c9] : memref<10xf32, #tpu.memory_space<smem>>
    %c0_0 = arith.constant 0 : index
    %c0_1 = arith.constant 0 : index
    %c0_2 = arith.constant 0 : index
    %10 = vector.load %arg0[%c0_0, %c0_1, %c0_2] : memref<6x1x128xf32, #tpu.memory_space<vmem>>, vector<1x1x128xf32>
    %11 = vector.shape_cast %10 : vector<1x1x128xf32> to vector<1x128xf32>
    %12 = vector.broadcast %3 : f32 to vector<1x128xf32>
    %13 = arith.mulf %12, %11 : vector<1x128xf32>
    %14 = vector.broadcast %0 : f32 to vector<1x128xf32>
    %15 = arith.addf %13, %14 : vector<1x128xf32>
    %c1_3 = arith.constant 1 : index
    %c0_4 = arith.constant 0 : index
    %c0_5 = arith.constant 0 : index
    %16 = vector.load %arg0[%c1_3, %c0_4, %c0_5] : memref<6x1x128xf32, #tpu.memory_space<vmem>>, vector<1x1x128xf32>
    %17 = vector.shape_cast %16 : vector<1x1x128xf32> to vector<1x128xf32>
    %18 = vector.broadcast %3 : f32 to vector<1x128xf32>
    %19 = arith.mulf %18, %17 : vector<1x128xf32>
    %20 = vector.broadcast %1 : f32 to vector<1x128xf32>
    %21 = arith.addf %19, %20 : vector<1x128xf32>
    %c2_6 = arith.constant 2 : index
    %c0_7 = arith.constant 0 : index
    %c0_8 = arith.constant 0 : index
    %22 = vector.load %arg0[%c2_6, %c0_7, %c0_8] : memref<6x1x128xf32, #tpu.memory_space<vmem>>, vector<1x1x128xf32>
    %23 = vector.shape_cast %22 : vector<1x1x128xf32> to vector<1x128xf32>
    %24 = vector.broadcast %3 : f32 to vector<1x128xf32>
    %25 = arith.mulf %24, %23 : vector<1x128xf32>
    %26 = vector.broadcast %2 : f32 to vector<1x128xf32>
    %27 = arith.addf %25, %26 : vector<1x128xf32>
    %cst = arith.constant 1.000000e+00 : f32
    %28 = vector.broadcast %cst : f32 to vector<1x128xf32>
    %29 = arith.divf %28, %27 : vector<1x128xf32>
    %30 = arith.mulf %15, %29 : vector<1x128xf32>
    %31 = vector.broadcast %4 : f32 to vector<1x128xf32>
    %32 = arith.mulf %31, %30 : vector<1x128xf32>
    %33 = vector.broadcast %6 : f32 to vector<1x128xf32>
    %34 = arith.addf %32, %33 : vector<1x128xf32>
    %35 = arith.mulf %21, %29 : vector<1x128xf32>
    %36 = vector.broadcast %5 : f32 to vector<1x128xf32>
    %37 = arith.mulf %36, %35 : vector<1x128xf32>
    %38 = vector.broadcast %7 : f32 to vector<1x128xf32>
    %39 = arith.addf %37, %38 : vector<1x128xf32>
    %c5_9 = arith.constant 5 : index
    %c0_10 = arith.constant 0 : index
    %c0_11 = arith.constant 0 : index
    %40 = vector.load %arg0[%c5_9, %c0_10, %c0_11] : memref<6x1x128xf32, #tpu.memory_space<vmem>>, vector<1x1x128xf32>
    %41 = vector.shape_cast %40 : vector<1x1x128xf32> to vector<1x128xf32>
    %c3_12 = arith.constant 3 : index
    %c0_13 = arith.constant 0 : index
    %c0_14 = arith.constant 0 : index
    %42 = vector.load %arg0[%c3_12, %c0_13, %c0_14] : memref<6x1x128xf32, #tpu.memory_space<vmem>>, vector<1x1x128xf32>
    %43 = vector.shape_cast %42 : vector<1x1x128xf32> to vector<1x128xf32>
    %44 = arith.subf %43, %34 : vector<1x128xf32>
    %45 = math.absf %44 : vector<1x128xf32>
    %c4_15 = arith.constant 4 : index
    %c0_16 = arith.constant 0 : index
    %c0_17 = arith.constant 0 : index
    %46 = vector.load %arg0[%c4_15, %c0_16, %c0_17] : memref<6x1x128xf32, #tpu.memory_space<vmem>>, vector<1x1x128xf32>
    %47 = vector.shape_cast %46 : vector<1x1x128xf32> to vector<1x128xf32>
    %48 = arith.subf %47, %39 : vector<1x128xf32>
    %49 = math.absf %48 : vector<1x128xf32>
    %50 = arith.addf %45, %49 : vector<1x128xf32>
    %cst_18 = arith.constant 0.000000e+00 : f32
    %51 = vector.broadcast %cst_18 : f32 to vector<1x128xf32>
    %52 = arith.cmpf ogt, %41, %51 : vector<1x128xf32>
    %53 = arith.mulf %50, %41 : vector<1x128xf32>
    %cst_19 = arith.constant 0.000000e+00 : f32
    %54 = vector.broadcast %cst_19 : f32 to vector<1x128xf32>
    %55 = arith.select %52, %53, %54 : vector<1x128xi1>, vector<1x128xf32>
    %56 = arith.subf %2, %8 : f32
    %57 = vector.shape_cast %55 : vector<1x128xf32> to vector<1x1x128xf32>
    %cst_20 = arith.constant dense<0.000000e+00> : vector<1xf32>
    %58 = vector.multi_reduction <add>, %57, %cst_20 [1, 2] : vector<1x1x128xf32> to vector<1xf32>
    %59 = vector.shape_cast %58 : vector<1xf32> to vector<1x1x1xf32>
    %60 = vector.extract %59[0, 0, 0] : f32 from vector<1x1x1xf32>
    %61 = arith.mulf %56, %56 : f32
    %62 = arith.mulf %9, %61 : f32
    %63 = arith.addf %60, %62 : f32
    %c0_21 = arith.constant 0 : index
    %c0_22 = arith.constant 0 : index
    %64 = memref.load %arg2[%c0_21, %c0_22] : memref<1x1xf32, #tpu.memory_space<smem>>
    memref.store %63, %arg2[%c0_21, %c0_22] : memref<1x1xf32, #tpu.memory_space<smem>>
    return
  }
}

</mosaic_0001>

<bundles_post_ra>
// kernel: scale_translation_loss.1
= control target key start
LH: loop header
LB: loop body
LE: loop exit
PB: predicated region body
PF: predicated region fallthrough
CT: control target
= control target key end

     0   :  { %7 = vsyncpa [#allocation4], 0  ;;  %s207_s0 = inlined_call_operand.vmem [shape: f32[6,1,128], index: 0, kind: input, shape index: {}]   ;;  %s208_s1 = inlined_call_operand.vmem [shape: f32[10], index: 1, kind: input, shape index: {}]   ;;  %s209_s2 = inlined_call_operand.hbm [shape: f32[1,1], index: 2, kind: output, shape index: {}]  }
   0x1   :  { %8 = vsyncpa [#allocation3], 0  ;;  %s17_s11 = sshll.u32 %s208_s1, 4  ;;  %s18_s11 = int_to_ptr.vmem [resolvable:$true] %s17_s11 }
   0x2   :  { %s127_s12 = scalar_lea.vmem %s18_s11, 16  ;;  %p132_p1 = scmp.lt.s32.totalorder %s18_s11, %s18_s11 }
   0x3   :  { %p128_p0 = scmp.ne.s32.totalorder %s18_s11, %s127_s12  ;;  %p133_p2 = scmp.lt.s32.totalorder %s127_s12, %s127_s12 }
   0x5   :  { %p134_p3 = por %p133_p2, %p132_p1 }
   0x7   :  { %p135_p4 = pnand %p134_p3, %p128_p0 }
   0x9   :  { %138 = shalt.err (!%p135_p4)
}
   0xa   :  { %s153_s13 = smov [#allocation2]  }
   0xb   :  { %20 = dma.vmem_to_smem %s18_s11, 16, %s153_s13, [#allocation4]  }
   0xc   :  { %149 = dma.done.wait [#allocation4], 16  }
   0xd   :  { %150 = vsyncadd [#allocation4], 4294967280 }
   0xe   :  { %24 = sfence }
   0xf   :  { %s173_s14 = sld [smem:[#allocation2 + $0x2]]  ;;  %s109_s15 = sld [smem:[#allocation2 + $0x3]]  ;;  %v117_v0 = vld [vmem:[%s207_s0 + $0x2] sm:$0x1]  ;;  %v35_v5 = vld [vmem:[%s207_s0] sm:$0x1] }
  0x10   :  { %s25_s1 = sld [smem:[#allocation2]]  ;;  %s107_s18 = sld [smem:[#allocation2 + $0x1]]  ;;  %v116_v6 = vld [vmem:[%s207_s0 + $0x1] sm:$0x1]  ;;  %v119_v22 = vld [vmem:[%s207_s0 + $0x3] sm:$0x1] }
  0x11   :  { %s110_s23 = sld [smem:[#allocation2 + $0x4]]  ;;  %s111_s24 = sld [smem:[#allocation2 + $0x5]]  ;;  %v120_v23 = vld [vmem:[%s207_s0 + $0x4] sm:$0x1]  ;;  %v118_v28 = vld [vmem:[%s207_s0 + $0x5] sm:$0x1] }
  0x12   :  { %s112_s25 = sld [smem:[#allocation2 + $0x6]]  ;;  %s113_s26 = sld [smem:[#allocation2 + $0x7]]  ;;  %vm73_vm0 = vcmp.gt.f32.partialorder %v118_v28, 0.0  ;;  %vm77_vm1 = vcmask 1040384  }
  0x13   :  { %s114_s5 = sld [smem:[#allocation2 + $0x8]]  ;;  %s115_s0 = sld [smem:[#allocation2 + $0x9]] }
  0x14   :  { %s139_s13 = scalar_lea.hbm %s209_s2, 16 }
  0x15   :  { %v36_v1 = vstv %s109_s15  ;;  %v48_v2 = vstv %s173_s14  ;;  %p140_p5 = scmp.ne.s32.totalorder %s209_s2, %s139_s13  ;;  %p143_p6 = scmp.lt.u32.totalorder %s139_s13, %s209_s2 }
  0x16   :  { %v47_v3 = vmul.f32 %v117_v0, %v36_v1  ;;  %v37_v7 = vmul.f32 %v36_v1, %v35_v5  ;;  %v42_v8 = vmul.f32 %v116_v6, %v36_v1  ;;  %v38_v9 = vstv %s25_s1 }
  0x17   :  { %v43_v10 = vstv %s107_s18  ;;  %v53_v14 = vstv %s110_s23  ;;  %v58_v15 = vstv %s111_s24  ;;  %p145_p7 = pnand %p143_p6, %p140_p5 }
  0x18   :  { %v49_v4 = vadd.f32 %v48_v2, %v47_v3  ;;  %v39_v11 = vadd.f32 %v38_v9, %v37_v7  ;;  %v44_v12 = vadd.f32 %v43_v10, %v42_v8  ;;  %v55_v18 = vstv %s112_s25 }
  0x19   :  { %v60_v19 = vstv %s113_s26  ;;  %s76_s6 = ssub.f32 %s173_s14, %s114_s5 }
  0x1a   :  { %125 = vrcp.f32 %v49_v4 }
  0x1b   :  { %s88_s7 = smul.f32 %s76_s6, %s76_s6 }
  0x1d   :  { %s89_s8 = smul.f32 %s115_s0, %s88_s7 }
  0x24   :  { %v126_v13 = vpop.eup %125 }
  0x25   :  { %v52_v16 = vmul.f32 %v126_v13, %v39_v11  ;;  %v57_v17 = vmul.f32 %v126_v13, %v44_v12 }
  0x27   :  { %v54_v20 = vmul.f32 %v53_v14, %v52_v16  ;;  %v59_v21 = vmul.f32 %v58_v15, %v57_v17 }
  0x29   :  { %v56_v24 = vadd.f32 %v55_v18, %v54_v20  ;;  %v61_v25 = vadd.f32 %v60_v19, %v59_v21 }
  0x2b   :  { %v66_v26 = vsub.f32 %v119_v22, %v56_v24  ;;  %v70_v27 = vsub.f32 %v120_v23, %v61_v25 }
  0x2d   :  { %v67_v29 = vand.u32 2147483647, %v66_v26  ;;  %v71_v30 = vand.u32 2147483647, %v70_v27 }
  0x2f   :  { %v72_v31 = vadd.f32 %v71_v30, %v67_v29 }
  0x31   :  { %v74_v32 = vmul.f32 %v118_v28, %v72_v31 }
  0x33   :  { %v75_v33 = vsel %vm73_vm0, %v74_v32, 0.0 }
  0x34   :  { %v78_v34 = vsel %vm77_vm1, %v75_v33, 0.0 }
  0x35   :  { %79 = vadd.xlane.f32.xlu0 %v78_v34 }
  0xc2   :  { %v80_v35 = vpop.xlane.xlu0 %79 }
  0xc3   :  { %v81_v36 = vrot.slane %v80_v35, 4 }
  0xc5   :  { %v82_v37 = vadd.f32 %v81_v36, %v80_v35 }
  0xc7   :  { %v83_v38 = vrot.slane %v82_v37, 2 }
  0xc9   :  { %v84_v39 = vadd.f32 %v83_v38, %v82_v37 }
  0xcb   :  { %v85_v40 = vrot.slane %v84_v39, 1 }
  0xcd   :  { %v86_v41 = vadd.f32 %v85_v40, %v84_v39 }
  0xcf   :  { %121 = vpush %v86_v41 }
 0x100   :  { %s122_s9 = spop %121 }
 0x101   :  { %s90_s10 = sadd.f32 %s122_s9, %s89_s8 }
 0x103   :  { %92 = sst [smem:[#allocation5]] %s90_s10 }
 0x104   :  { %148 = shalt.err (!%p145_p7)
}
 0x105   :  { %s154_s14 = smov [#allocation5]  }
 0x106   :  { %100 = dma.smem_to_hbm %s154_s14, 16, %s209_s2, [#allocation3]  }
 0x107   :  { %151 = dma.done.wait [#allocation3], 16  }
 0x108   :  { %152 = vsyncadd [#allocation3], 4294967280 }
 0x109   :  { %104 = sfence }
 0x10a   :  { %105 = vsyncpa [#allocation3], 1 }
 0x10b   :  { %106 = vsyncpa [#allocation4], 1 }

</bundles_post_ra>
